<compile_context>
chip_gen: v5e
topology: v5e:2x2
jax: 0.10.0
libtpu: 0.0.40
codegen_flags: <defaults>
</compile_context>

<pallas_src>
import functools

import jax
import jax.numpy as jnp
from jax.experimental import pallas as pl
from jax.experimental.pallas import tpu as pltpu

ORIGINAL_DIM = 256
HIDDEN1 = 128
HIDDEN2 = 64
HIDDEN2_PAD = 128   # lane-dense padding of the 64-wide hidden layer
REDUCED_DIM = 3
OUT_PAD = 8         # output padded to 8 columns (32 B/row writeback, 8-aligned)

_MAX_TILE = 2048    # rows per grid step (2 MiB f32 input block)


def _mlp_kernel(x_ref, w1_ref, b1_ref, w2_ref, b2_ref, w3_ref, b3_ref, o_ref):
    """3-layer MLP hot path: two ReLU-activated matmuls + final projection.

    Feature dims 256 / 128 / 128 are full-lane multiples, so the two big
    matmuls, bias adds and ReLUs run on unmasked full vregs; only the tiny
    (tile, 8) final projection/store uses masked lanes. Biases are read once
    in this straight-line body, so broadcasts are not re-materialized.
    """
    x = x_ref[...]
    h1 = jnp.dot(x, w1_ref[...], preferred_element_type=jnp.float32) + b1_ref[...]
    h1 = jnp.maximum(h1, 0.0)
    h2 = jnp.dot(h1, w2_ref[...], preferred_element_type=jnp.float32) + b2_ref[...]
    h2 = jnp.maximum(h2, 0.0)
    out = jnp.dot(h2, w3_ref[...], preferred_element_type=jnp.float32) + b3_ref[...]
    o_ref[...] = out.astype(o_ref.dtype)


def init_params(key, original_dim=ORIGINAL_DIM, reduced_dim=REDUCED_DIM,
                dtype=jnp.float32):
    """Deterministic init mirroring nn.Linear default (uniform +-1/sqrt(fan_in)).

    Weights are stored as (in_features, out_features)."""
    dims = [(original_dim, HIDDEN1), (HIDDEN1, HIDDEN2), (HIDDEN2, reduced_dim)]
    params = {}
    keys = jax.random.split(key, 2 * len(dims))
    for idx, (fan_in, fan_out) in enumerate(dims):
        bound = 1.0 / (fan_in ** 0.5)
        w = jax.random.uniform(keys[2 * idx], (fan_in, fan_out),
                               minval=-bound, maxval=bound, dtype=dtype)
        b = jax.random.uniform(keys[2 * idx + 1], (1, fan_out),
                               minval=-bound, maxval=bound, dtype=dtype)
        params[f"w{idx + 1}"] = w
        params[f"b{idx + 1}"] = b
    return params


def pad_params_for_kernel(params):
    """One-time kernel-layout prep (hoisted out of the per-call path).

    Zero-pads the 64-wide hidden layer to 128 lanes and the 3-wide output to
    OUT_PAD columns. Exact: padded rows/cols are zero, so they contribute
    nothing and the padded output columns are exactly zero."""
    return {
        "w1": params["w1"],
        "b1": params["b1"],
        "w2": jnp.pad(params["w2"], ((0, 0), (0, HIDDEN2_PAD - HIDDEN2))),
        "b2": jnp.pad(params["b2"], ((0, 0), (0, HIDDEN2_PAD - HIDDEN2))),
        "w3": jnp.pad(params["w3"], ((0, HIDDEN2_PAD - HIDDEN2),
                                     (0, OUT_PAD - REDUCED_DIM))),
        "b3": jnp.pad(params["b3"], ((0, 0), (0, OUT_PAD - REDUCED_DIM))),
    }


def _round_up(n, m):
    return ((n + m - 1) // m) * m


def _pick_batch_tiling(batch):
    """Choose (padded_batch, batch_tile).

    - batch < 256: one tile covering the 8-aligned batch, grid=(1,) — the call
      is launch/DMA-latency bound; extra steps only add pipeline overhead.
    - batch >= 256: an even number of 'parallel' grid steps (>= 2) so v7x's
      two TensorCores get a balanced 50/50 split, tiles capped at _MAX_TILE
      rows, and the batch padded only to 8*steps (at most 8*steps-1 garbage
      rows instead of up to 1023).
    """
    b_pad = _round_up(batch, 8)
    if b_pad < 256:
        return b_pad, b_pad
    steps = max(2, -(-b_pad // _MAX_TILE))   # cdiv
    if steps % 2:
        steps += 1                           # even step count: balanced on v7x
    b_pad = _round_up(batch, 8 * steps)
    return b_pad, b_pad // steps


@functools.partial(jax.jit, static_argnames=("batch_tile",))
def _reducer_pallas(x2d, w1, b1, w2p, b2p, w3p, b3p, *, batch_tile):
    b_pad, d_in = x2d.shape
    grid = (b_pad // batch_tile,)

    # Weights/biases are small and their block index is constant across the
    # grid, so they stay VMEM-resident (no per-step DMA).
    full = lambda arr: pl.BlockSpec(arr.shape, lambda i: (0,) * arr.ndim)

    return pl.pallas_call(
        _mlp_kernel,
        out_shape=jax.ShapeDtypeStruct((b_pad, OUT_PAD), x2d.dtype),
        grid_spec=pltpu.PrefetchScalarGridSpec(
            num_scalar_prefetch=0,
            grid=grid,
            in_specs=[
                pl.BlockSpec((batch_tile, d_in), lambda i: (i, 0)),
                full(w1), full(b1), full(w2p), full(b2p), full(w3p), full(b3p),
            ],
            out_specs=pl.BlockSpec((batch_tile, OUT_PAD), lambda i: (i, 0)),
        ),
        compiler_params=pltpu.CompilerParams(
            dimension_semantics=("parallel",),
            vmem_limit_bytes=32 * 1024 * 1024,
        ),
    )(x2d, w1, b1, w2p, b2p, w3p, b3p)


def state_reducer_forward(kernel_params, x):
    """Forward pass matching the PyTorch StateReducer semantics.

    `kernel_params` must come from `pad_params_for_kernel` (padded once)."""
    # Glue: replicate the PyTorch 3D -> 2D dispatch in plain JAX (static shapes).
    if x.ndim == 3:
        if x.shape[0] <= 4:
            x = x[-1, :, :]
        else:
            x = jnp.squeeze(x, axis=1)
    if x.ndim != 2:
        raise ValueError(f"Unexpected input shape: {x.shape}")

    batch = x.shape[0]
    b_pad, batch_tile = _pick_batch_tiling(batch)
    if b_pad != batch:
        x = jnp.pad(x, ((0, b_pad - batch), (0, 0)))

    out = _reducer_pallas(x, kernel_params["w1"], kernel_params["b1"],
                          kernel_params["w2"], kernel_params["b2"],
                          kernel_params["w3"], kernel_params["b3"],
                          batch_tile=batch_tile)
    # Slice off batch padding and the (small, 8-wide) output padding.
    return out[:batch, :REDUCED_DIM]


def _reference_forward(params, x):
    """Pure-JAX reference in full f32 precision."""
    if x.ndim == 3:
        x = x[-1, :, :] if x.shape[0] <= 4 else jnp.squeeze(x, axis=1)
    hi = jax.lax.Precision.HIGHEST
    h = jnp.maximum(jnp.dot(x, params["w1"], precision=hi) + params["b1"], 0.0)
    h = jnp.maximum(jnp.dot(h, params["w2"], precision=hi) + params["b2"], 0.0)
    return jnp.dot(h, params["w3"], precision=hi) + params["b3"]


if __name__ == "__main__":
    key = jax.random.PRNGKey(0)
    k_param, k_x, k_x2 = jax.random.split(key, 3)

    params = init_params(k_param)
    kparams = pad_params_for_kernel(params)   # one-time prep, outside hot path

    # LSTM-cell-state-style input: (num_layers=2, batch=8, hidden=256).
    # num_layers <= 4, so forward takes the last layer's state -> (8, 256).
    x = jax.random.normal(k_x, (2, 8, ORIGINAL_DIM), dtype=jnp.float32)
    out = jax.block_until_ready(state_reducer_forward(kparams, x))
    ref = _reference_forward(params, x)
    assert out.shape == (8, REDUCED_DIM), out.shape
    assert jnp.allclose(out, ref, atol=1e-4, rtol=1e-4), "mismatch vs reference (small batch)"

    # Exercise the multi-tile 'parallel' grid + batch-padding path (2D input).
    x2 = jax.random.normal(k_x2, (260, ORIGINAL_DIM), dtype=jnp.float32)
    out2 = jax.block_until_ready(state_reducer_forward(kparams, x2))
    ref2 = _reference_forward(params, x2)
    assert out2.shape == (260, REDUCED_DIM), out2.shape
    assert jnp.allclose(out2, ref2, atol=1e-4, rtol=1e-4), "mismatch vs reference (multi-tile)"

    print("KERNEL_OK")
</pallas_src>

<mosaic_0001>
module attributes {stable_mosaic.version = 11 : i64} {
  func.func @_mlp_kernel(%arg0: i32, %arg1: memref<8x256xf32, #tpu.memory_space<vmem>>, %arg2: memref<256x128xf32, #tpu.memory_space<vmem>>, %arg3: memref<1x128xf32, #tpu.memory_space<vmem>>, %arg4: memref<128x128xf32, #tpu.memory_space<vmem>>, %arg5: memref<1x128xf32, #tpu.memory_space<vmem>>, %arg6: memref<128x8xf32, #tpu.memory_space<vmem>>, %arg7: memref<1x8xf32, #tpu.memory_space<vmem>>, %arg8: memref<8x8xf32, #tpu.memory_space<vmem>>) attributes {dimension_semantics = [#tpu.dimension_semantics<parallel>], iteration_bounds = array<i64: 1>, scalar_prefetch = 0 : i64, scratch_operands = 0 : i64, tpu.core_type = #tpu.core_type<tc>, window_params = [{transform_indices = @transform_0, window_bounds = array<i64: 8, 256>}, {pipeline_mode = #tpu.pipeline_mode<synchronous>, transform_indices = @transform_1, window_bounds = array<i64: 256, 128>}, {pipeline_mode = #tpu.pipeline_mode<synchronous>, transform_indices = @transform_2, window_bounds = array<i64: 1, 128>}, {pipeline_mode = #tpu.pipeline_mode<synchronous>, transform_indices = @transform_3, window_bounds = array<i64: 128, 128>}, {pipeline_mode = #tpu.pipeline_mode<synchronous>, transform_indices = @transform_4, window_bounds = array<i64: 1, 128>}, {pipeline_mode = #tpu.pipeline_mode<synchronous>, transform_indices = @transform_5, window_bounds = array<i64: 128, 8>}, {pipeline_mode = #tpu.pipeline_mode<synchronous>, transform_indices = @transform_6, window_bounds = array<i64: 1, 8>}, {transform_indices = @transform_7, window_bounds = array<i64: 8, 8>}]} {
    %c0 = arith.constant 0 : index
    %c0_0 = arith.constant 0 : index
    %0 = vector.load %arg1[%c0, %c0_0] : memref<8x256xf32, #tpu.memory_space<vmem>>, vector<8x256xf32>
    %c0_1 = arith.constant 0 : index
    %c0_2 = arith.constant 0 : index
    %1 = vector.load %arg2[%c0_1, %c0_2] : memref<256x128xf32, #tpu.memory_space<vmem>>, vector<256x128xf32>
    %cst = arith.constant dense<0.000000e+00> : vector<8x128xf32>
    %2 = tpu.matmul %0, %1, %cst {dimension_numbers = #tpu.dot_dimension_numbers<[1], [0], [0], [1], [0, 0, 1, 1], [], []>} : vector<8x256xf32>, vector<256x128xf32>, vector<8x128xf32> -> vector<8x128xf32>
    %c0_3 = arith.constant 0 : index
    %c0_4 = arith.constant 0 : index
    %3 = vector.load %arg3[%c0_3, %c0_4] : memref<1x128xf32, #tpu.memory_space<vmem>>, vector<1x128xf32>
    %4 = vector.broadcast %3 : vector<1x128xf32> to vector<8x128xf32>
    %5 = arith.addf %2, %4 : vector<8x128xf32>
    %cst_5 = arith.constant 0.000000e+00 : f32
    %6 = vector.broadcast %cst_5 : f32 to vector<8x128xf32>
    %7 = arith.maximumf %5, %6 : vector<8x128xf32>
    %c0_6 = arith.constant 0 : index
    %c0_7 = arith.constant 0 : index
    %8 = vector.load %arg4[%c0_6, %c0_7] : memref<128x128xf32, #tpu.memory_space<vmem>>, vector<128x128xf32>
    %cst_8 = arith.constant dense<0.000000e+00> : vector<8x128xf32>
    %9 = tpu.matmul %7, %8, %cst_8 {dimension_numbers = #tpu.dot_dimension_numbers<[1], [0], [0], [1], [0, 0, 1, 1], [], []>} : vector<8x128xf32>, vector<128x128xf32>, vector<8x128xf32> -> vector<8x128xf32>
    %c0_9 = arith.constant 0 : index
    %c0_10 = arith.constant 0 : index
    %10 = vector.load %arg5[%c0_9, %c0_10] : memref<1x128xf32, #tpu.memory_space<vmem>>, vector<1x128xf32>
    %11 = vector.broadcast %10 : vector<1x128xf32> to vector<8x128xf32>
    %12 = arith.addf %9, %11 : vector<8x128xf32>
    %cst_11 = arith.constant 0.000000e+00 : f32
    %13 = vector.broadcast %cst_11 : f32 to vector<8x128xf32>
    %14 = arith.maximumf %12, %13 : vector<8x128xf32>
    %c0_12 = arith.constant 0 : index
    %c0_13 = arith.constant 0 : index
    %15 = vector.load %arg6[%c0_12, %c0_13] : memref<128x8xf32, #tpu.memory_space<vmem>>, vector<128x8xf32>
    %cst_14 = arith.constant dense<0.000000e+00> : vector<8x8xf32>
    %16 = tpu.matmul %14, %15, %cst_14 {dimension_numbers = #tpu.dot_dimension_numbers<[1], [0], [0], [1], [0, 0, 1, 1], [], []>} : vector<8x128xf32>, vector<128x8xf32>, vector<8x8xf32> -> vector<8x8xf32>
    %c0_15 = arith.constant 0 : index
    %c0_16 = arith.constant 0 : index
    %17 = vector.load %arg7[%c0_15, %c0_16] : memref<1x8xf32, #tpu.memory_space<vmem>>, vector<1x8xf32>
    %18 = vector.broadcast %17 : vector<1x8xf32> to vector<8x8xf32>
    %19 = arith.addf %16, %18 : vector<8x8xf32>
    %c0_17 = arith.constant 0 : index
    %c0_18 = arith.constant 0 : index
    %20 = vector.load %arg8[%c0_17, %c0_18] : memref<8x8xf32, #tpu.memory_space<vmem>>, vector<8x8xf32>
    tpu.vector_store %arg8[%c0_17, %c0_18], %19 {strides = array<i32>} : memref<8x8xf32, #tpu.memory_space<vmem>>, vector<8x8xf32>,
    return
  }
  func.func @transform_0(%arg0: i32) -> (i32, i32) {
    %c0_i32 = arith.constant 0 : i32
    %c0_i32_0 = arith.constant 0 : i32
    return %arg0, %c0_i32 : i32, i32
  }
  func.func @transform_1(%arg0: i32) -> (i32, i32) {
    %c0_i32 = arith.constant 0 : i32
    %c0_i32_0 = arith.constant 0 : i32
    %c0_i32_1 = arith.constant 0 : i32
    return %c0_i32, %c0_i32_0 : i32, i32
  }
  func.func @transform_2(%arg0: i32) -> (i32, i32) {
    %c0_i32 = arith.constant 0 : i32
    %c0_i32_0 = arith.constant 0 : i32
    %c0_i32_1 = arith.constant 0 : i32
    return %c0_i32, %c0_i32_0 : i32, i32
  }
  func.func @transform_3(%arg0: i32) -> (i32, i32) {
    %c0_i32 = arith.constant 0 : i32
    %c0_i32_0 = arith.constant 0 : i32
    %c0_i32_1 = arith.constant 0 : i32
    return %c0_i32, %c0_i32_0 : i32, i32
  }
  func.func @transform_4(%arg0: i32) -> (i32, i32) {
    %c0_i32 = arith.constant 0 : i32
    %c0_i32_0 = arith.constant 0 : i32
    %c0_i32_1 = arith.constant 0 : i32
    return %c0_i32, %c0_i32_0 : i32, i32
  }
  func.func @transform_5(%arg0: i32) -> (i32, i32) {
    %c0_i32 = arith.constant 0 : i32
    %c0_i32_0 = arith.constant 0 : i32
    %c0_i32_1 = arith.constant 0 : i32
    return %c0_i32, %c0_i32_0 : i32, i32
  }
  func.func @transform_6(%arg0: i32) -> (i32, i32) {
    %c0_i32 = arith.constant 0 : i32
    %c0_i32_0 = arith.constant 0 : i32
    %c0_i32_1 = arith.constant 0 : i32
    return %c0_i32, %c0_i32_0 : i32, i32
  }
  func.func @transform_7(%arg0: i32) -> (i32, i32) {
    %c0_i32 = arith.constant 0 : i32
    %c0_i32_0 = arith.constant 0 : i32
    return %arg0, %c0_i32 : i32, i32
  }
}

</mosaic_0001>

<bundles_post_ra>
// kernel: _reducer_pallas.1
= control target key start
LH: loop header
LB: loop body
LE: loop exit
PB: predicated region body
PF: predicated region fallthrough
CT: control target
= control target key end

     0   :  { %12 = vsyncpa [#allocation3], 0  ;;  %s482_s0 = inlined_call_operand.hbm [shape: f32[8,256], index: 0, kind: input, shape index: {}]   ;;  %s483_s1 = inlined_call_operand.hbm [shape: f32[256,128], index: 1, kind: input, shape index: {}]   ;;  %s484_s2 = inlined_call_operand.vmem [shape: f32[1,128], index: 2, kind: input, shape index: {}]   ;;  %s485_s3 = inlined_call_operand.vmem [shape: f32[128,128], index: 3, kind: input, shape index: {}]   ;;  %s486_s4 = inlined_call_operand.vmem [shape: f32[1,128], index: 4, kind: input, shape index: {}]   ;;  %s487_s5 = inlined_call_operand.vmem [shape: f32[128,8], index: 5, kind: input, shape index: {}]   ;;  %s488_s6 = inlined_call_operand.vmem [shape: f32[1,8], index: 6, kind: input, shape index: {}]   ;;  %s489_s7 = inlined_call_operand.hbm [shape: f32[8,8], index: 7, kind: output, shape index: {}]  }
   0x1   :  { %13 = vsyncpa [#allocation6], 0 }
   0x2   :  { %14 = vsyncpa [#allocation4], 0  ;;  %s20_s26 = sshll.u32 %s482_s0, 4  ;;  %s323_s27 = smov [#allocation2]   ;;  %s21_s26 = int_to_ptr.hbm [resolvable:$true] %s20_s26 }
   0x3   :  { %s22_s28 = sshll.u32 %s323_s27, 4  ;;  %s30_s8 = sshll.u32 %s483_s1, 4  ;;  %s23_s28 = int_to_ptr.vmem [resolvable:$true] %s22_s28  ;;  %s31_s8 = int_to_ptr.hbm [resolvable:$true] %s30_s8 }
   0x4   :  { %25 = dma.hbm_to_vmem [thread:$0]  %s21_s26, 256, %s23_s28, [#allocation3]  }
   0x5   :  { %s324_s9 = smov [#allocation5]   ;;  %s325_s11 = smov 128  }
   0x6   :  { %s32_s10 = sshll.u32 %s324_s9, 4  ;;  %s326_s12 = smov 8   ;;  %s33_s10 = int_to_ptr.vmem [resolvable:$true] %s32_s10 }
   0x7   :  { %38 = dma.hbm_to_vmem [thread:$0]  %s31_s8, 4096, %s33_s10, [#allocation6], %s325_s11, %s325_s11, %s326_s12  }
   0x8   :  { %317 = dma.done.wait [#allocation3], 256  }
   0x9   :  { %318 = vsyncadd [#allocation3], 4294967040 }
   0xa   :  { %319 = dma.done.wait [#allocation6], 4096  }
   0xb   :  { %320 = vsyncadd [#allocation6], 4294963200  ;;  %v74_v0 = vld [vmem:[#allocation5 + $0x78] sm:$0xff]  ;;  %v73_v1 = vld [vmem:[#allocation5 + $0x70] sm:$0xff]  ;;  %s327_s28 = smov [#allocation7]   ;;  %s226_s9 = sshll.u32 %s489_s7, 4  ;;  %s227_s9 = int_to_ptr.hbm [resolvable:$true] %s226_s9 }
   0xc   :  { %v90_v2 = vld [vmem:[#allocation5 + $0xf8] sm:$0xff]  ;;  %95 = vmatpush.msra.mxu0 %v74_v0  ;;  %v89_v3 = vld [vmem:[#allocation5 + $0xf0] sm:$0xff]  ;;  %v72_v4 = vld [vmem:[#allocation5 + $0x68] sm:$0xff]  ;;  %s224_s29 = sshll.u32 %s327_s28, 4  ;;  %vm217_vm0 = vcmask 64512   ;;  %s225_s29 = int_to_ptr.vmem [resolvable:$true] %s224_s29 }
   0xd   :  { %115 = vmatpush.msra.mxu1 %v90_v2  ;;  %v88_v5 = vld [vmem:[#allocation5 + $0xe8] sm:$0xff]  ;;  %v71_v6 = vld [vmem:[#allocation5 + $0x60] sm:$0xff]  ;;  %v70_v8 = vld [vmem:[#allocation5 + $0x58] sm:$0xff] }
   0xe   :  { %96 = vmatpush.msra.mxu0 %v73_v1  ;;  %v87_v7 = vld [vmem:[#allocation5 + $0xe0] sm:$0xff]  ;;  %v86_v9 = vld [vmem:[#allocation5 + $0xd8] sm:$0xff]  ;;  %v69_v10 = vld [vmem:[#allocation5 + $0x50] sm:$0xff] }
   0xf   :  { %116 = vmatpush.msra.mxu1 %v89_v3  ;;  %v85_v11 = vld [vmem:[#allocation5 + $0xd0] sm:$0xff]  ;;  %v68_v12 = vld [vmem:[#allocation5 + $0x48] sm:$0xff]  ;;  %v150_v15 = vld [vmem:[%s485_s3 + $0x70] sm:$0xff] }
  0x10   :  { %97 = vmatpush.msra.mxu0 %v72_v4  ;;  %v84_v13 = vld [vmem:[#allocation5 + $0xc8] sm:$0xff]  ;;  %v67_v16 = vld [vmem:[#allocation5 + $0x40] sm:$0xff]  ;;  %v149_v18 = vld [vmem:[%s485_s3 + $0x68] sm:$0xff] }
  0x11   :  { %117 = vmatpush.msra.mxu1 %v88_v5  ;;  %v151_v14 = vld [vmem:[%s485_s3 + $0x78] sm:$0xff]  ;;  %v83_v17 = vld [vmem:[#allocation5 + $0xc0] sm:$0xff]  ;;  %v66_v19 = vld [vmem:[#allocation5 + $0x38] sm:$0xff] }
  0x12   :  { %98 = vmatpush.msra.mxu0 %v71_v6  ;;  %156 = vmatpush.msra.mxu2 %v151_v14  ;;  %v82_v20 = vld [vmem:[#allocation5 + $0xb8] sm:$0xff]  ;;  %v65_v21 = vld [vmem:[#allocation5 + $0x30] sm:$0xff]  ;;  %v147_v24 = vld [vmem:[%s485_s3 + $0x58] sm:$0xff] }
  0x13   :  { %118 = vmatpush.msra.mxu1 %v87_v7  ;;  %v148_v22 = vld [vmem:[%s485_s3 + $0x60] sm:$0xff]  ;;  %v64_v25 = vld [vmem:[#allocation5 + $0x28] sm:$0xff]  ;;  %v146_v27 = vld [vmem:[%s485_s3 + $0x50] sm:$0xff] }
  0x14   :  { %99 = vmatpush.msra.mxu0 %v70_v8  ;;  %157 = vmatpush.msra.mxu2 %v150_v15  ;;  %v81_v23 = vld [vmem:[#allocation5 + $0xb0] sm:$0xff]  ;;  %v80_v26 = vld [vmem:[#allocation5 + $0xa8] sm:$0xff]  ;;  %v63_v28 = vld [vmem:[#allocation5 + $0x20] sm:$0xff] }
  0x15   :  { %119 = vmatpush.msra.mxu1 %v86_v9  ;;  %v79_v29 = vld [vmem:[#allocation5 + $0xa0] sm:$0xff]  ;;  %v145_v30 = vld [vmem:[%s485_s3 + $0x48] sm:$0xff]  ;;  %v144_v33 = vld [vmem:[%s485_s3 + $0x40] sm:$0xff] }
  0x16   :  { %100 = vmatpush.msra.mxu0 %v69_v10  ;;  %158 = vmatpush.msra.mxu2 %v149_v18  ;;  %v62_v31 = vld [vmem:[#allocation5 + $0x18] sm:$0xff]  ;;  %v61_v34 = vld [vmem:[#allocation5 + $0x10] sm:$0xff]  ;;  %v143_v36 = vld [vmem:[%s485_s3 + $0x38] sm:$0xff] }
  0x17   :  { %120 = vmatpush.msra.mxu1 %v85_v11  ;;  %v78_v32 = vld [vmem:[#allocation5 + $0x98] sm:$0xff]  ;;  %v77_v35 = vld [vmem:[#allocation5 + $0x90] sm:$0xff]  ;;  %v60_v37 = vld [vmem:[#allocation5 + $0x8] sm:$0xff] }
  0x18   :  { %101 = vmatpush.msra.mxu0 %v68_v12  ;;  %159 = vmatpush.msra.mxu2 %v148_v22  ;;  %v76_v38 = vld [vmem:[#allocation5 + $0x88] sm:$0xff]  ;;  %v142_v39 = vld [vmem:[%s485_s3 + $0x30] sm:$0xff]  ;;  %v57_v42 = vld [vmem:[#allocation2] sm:$0xff] }
  0x19   :  { %121 = vmatpush.msra.mxu1 %v84_v13  ;;  %v59_v40 = vld [vmem:[#allocation5] sm:$0xff]  ;;  %v58_v43 = vld [vmem:[#allocation2 + $0x8] sm:$0xff]  ;;  %v140_v45 = vld [vmem:[%s485_s3 + $0x20] sm:$0xff] }
  0x1a   :  { %102 = vmatpush.msra.mxu0 %v67_v16  ;;  %160 = vmatpush.msra.mxu2 %v147_v24  ;;  %v75_v41 = vld [vmem:[#allocation5 + $0x80] sm:$0xff]  ;;  %v141_v44 = vld [vmem:[%s485_s3 + $0x28] sm:$0xff]  ;;  %v139_v46 = vld [vmem:[%s485_s3 + $0x18] sm:$0xff] }
  0x1b   :  { %122 = vmatpush.msra.mxu1 %v83_v17  ;;  %v138_v47 = vld [vmem:[%s485_s3 + $0x10] sm:$0xff]  ;;  %v137_v48 = vld [vmem:[%s485_s3 + $0x8] sm:$0xff]  ;;  %v136_v49 = vld [vmem:[%s485_s3] sm:$0xff] }
  0x1c   :  { %103 = vmatpush.msra.mxu0 %v66_v19  ;;  %161 = vmatpush.msra.mxu2 %v146_v27  ;;  %v192_v50 = vld [vmem:[%s487_s5 + $0x78] sm:$0xff]  ;;  %v191_v51 = vld [vmem:[%s487_s5 + $0x70] sm:$0xff]  ;;  %v190_v52 = vld [vmem:[%s487_s5 + $0x68] sm:$0xff] }
  0x1d   :  { %123 = vmatpush.msra.mxu1 %v82_v20  ;;  %197 = vmatpush.msra.mxu3 %v192_v50  ;;  %v189_v53 = vld [vmem:[%s487_s5 + $0x60] sm:$0xff]  ;;  %v188_v54 = vld [vmem:[%s487_s5 + $0x58] sm:$0xff]  ;;  %v187_v55 = vld [vmem:[%s487_s5 + $0x50] sm:$0xff] }
  0x1e   :  { %104 = vmatpush.msra.mxu0 %v65_v21  ;;  %162 = vmatpush.msra.mxu2 %v145_v30  ;;  %v186_v56 = vld [vmem:[%s487_s5 + $0x48] sm:$0xff]  ;;  %v185_v57 = vld [vmem:[%s487_s5 + $0x40] sm:$0xff]  ;;  %v184_v58 = vld [vmem:[%s487_s5 + $0x38] sm:$0xff] }
  0x1f   :  { %124 = vmatpush.msra.mxu1 %v81_v23  ;;  %198 = vmatpush.msra.mxu3 %v191_v51  ;;  %v183_v59 = vld [vmem:[%s487_s5 + $0x30] sm:$0xff]  ;;  %v182_v60 = vld [vmem:[%s487_s5 + $0x28] sm:$0xff]  ;;  %v181_v61 = vld [vmem:[%s487_s5 + $0x20] sm:$0xff] }
  0x20   :  { %105 = vmatpush.msra.mxu0 %v64_v25  ;;  %163 = vmatpush.msra.mxu2 %v144_v33  ;;  %v242_v62 = vld [vmem:[%s484_s2] ss:$0 sm:$0xff]  ;;  %v180_v63 = vld [vmem:[%s487_s5 + $0x18] sm:$0xff]  ;;  %v179_v5 = vld [vmem:[%s487_s5 + $0x10] sm:$0xff] }
  0x21   :  { %125 = vmatpush.msra.mxu1 %v80_v26  ;;  %199 = vmatpush.msra.mxu3 %v190_v52  ;;  %v178_v6 = vld [vmem:[%s487_s5 + $0x8] sm:$0xff]  ;;  %v177_v7 = vld [vmem:[%s487_s5] sm:$0xff] }
  0x22   :  { %106 = vmatpush.msra.mxu0 %v63_v28  ;;  %164 = vmatpush.msra.mxu2 %v143_v36  ;;  %v243_v8 = vld [vmem:[%s486_s4] ss:$0 sm:$0xff] }
  0x23   :  { %126 = vmatpush.msra.mxu1 %v79_v29  ;;  %200 = vmatpush.msra.mxu3 %v189_v53  ;;  %v244_v12 = vld [vmem:[%s488_s6] ss:$0 sm:$0xff] }
  0x24   :  { %107 = vmatpush.msra.mxu0 %v62_v31  ;;  %165 = vmatpush.msra.mxu2 %v142_v39 }
  0x25   :  { %127 = vmatpush.msra.mxu1 %v78_v32  ;;  %201 = vmatpush.msra.mxu3 %v188_v54 }
  0x26   :  { %108 = vmatpush.msra.mxu0 %v61_v34  ;;  %166 = vmatpush.msra.mxu2 %v141_v44 }
  0x27   :  { %128 = vmatpush.msra.mxu1 %v77_v35  ;;  %202 = vmatpush.msra.mxu3 %v187_v55 }
  0x28   :  { %109 = vmatpush.msra.mxu0 %v60_v37  ;;  %167 = vmatpush.msra.mxu2 %v140_v45 }
  0x29   :  { %129 = vmatpush.msra.mxu1 %v76_v38  ;;  %203 = vmatpush.msra.mxu3 %v186_v56 }
  0x2a   :  { %110 = vmatpush.msra.mxu0 %v59_v40  ;;  %168 = vmatpush.msra.mxu2 %v139_v46 }
  0x2b   :  { %130 = vmatpush.msra.mxu1 %v75_v41  ;;  %111 = vmatmul.f32.vlgmr.msra.gmra.mxu0 %v57_v42 }
  0x2c   :  { %131 = vmatmul.f32.vlgmr.msra.gmra.mxu1 %v58_v43  ;;  %169 = vmatpush.msra.mxu2 %v138_v47 }
  0x2d   :  { %204 = vmatpush.msra.mxu3 %v185_v57 }
  0x2e   :  { %170 = vmatpush.msra.mxu2 %v137_v48 }
  0x2f   :  { %205 = vmatpush.msra.mxu3 %v184_v58 }
  0x30   :  { %171 = vmatpush.msra.mxu2 %v136_v49 }
  0x31   :  { %206 = vmatpush.msra.mxu3 %v183_v59 }
  0x33   :  { %207 = vmatpush.msra.mxu3 %v182_v60 }
  0x35   :  { %208 = vmatpush.msra.mxu3 %v181_v61 }
  0x37   :  { %209 = vmatpush.msra.mxu3 %v180_v63 }
  0x39   :  { %210 = vmatpush.msra.mxu3 %v179_v5 }
  0x3b   :  { %211 = vmatpush.msra.mxu3 %v178_v6 }
  0x3d   :  { %212 = vmatpush.msra.mxu3 %v177_v7 }
  0xa8   :  { %v112_v0 = vpop.f32.mrf.mxu0 }
  0xa9   :  { %v132_v1 = vpop.f32.mrf.mxu1  ;;  %v113_v2 = vadd.f32 %v242_v62, %v112_v0 }
  0xab   :  { %v133_v3 = vadd.f32 %v132_v1, %v113_v2 }
  0xad   :  { %v135_v4 = vmax.f32 %v133_v3, 0.0 }
  0xaf   :  { %172 = vmatmul.f32.vlgmr.msra.gmra.mxu2 %v135_v4 }
 0x132   :  { %v173_v9 = vpop.f32.mrf.mxu2 }
 0x133   :  { %v174_v10 = vadd.f32 %v243_v8, %v173_v9 }
 0x135   :  { %v176_v11 = vmax.f32 %v174_v10, 0.0 }
 0x137   :  { %213 = vmatmul.f32.vlgmr.msra.gmra.mxu3 %v176_v11 }
 0x1ba   :  { %v214_v13 = vpop.f32.mrf.mxu3 }
 0x1bb   :  { %v215_v14 = vadd.f32 %v244_v12, %v214_v13 }
 0x1bd   :  { %218 = vst.msk [vmem:[#allocation7] sm:$0xff] %vm217_vm0, %v215_v14 }
 0x1be   :  { %229 = dma.vmem_to_hbm [thread:$0]  %s225_s29, 128, %s227_s9, [#allocation4]  }
 0x1bf   :  { %321 = dma.done.wait [#allocation4], 128  }
 0x1c0   :  { %322 = vsyncadd [#allocation4], 4294967168 }
 0x1c1   :  { %234 = vsyncpa [#allocation3], 1 }
 0x1c2   :  { %235 = vsyncpa [#allocation6], 1 }
 0x1c3   :  { %236 = vsyncpa [#allocation4], 1 }

</bundles_post_ra>
